<compile_context>
chip_gen: v7x
topology: tpu7x:2x2x1
jax: 0.10.0
libtpu: 0.0.40
codegen_flags: <defaults>
</compile_context>

<pallas_src>
import jax
import jax.numpy as jnp
from jax.experimental import pallas as pl
from jax.experimental.pallas import tpu as pltpu


# ---------------------------------------------------------------------------
# Path 1: HBM -> HBM DMA copy (no VMEM round-trip).
# ---------------------------------------------------------------------------
def _dma_copy_kernel(x_hbm, o_hbm, sem):
    cp = pltpu.make_async_copy(x_hbm, o_hbm, sem)
    cp.start()
    cp.wait()


def _pallas_dma_copy(x: jnp.ndarray) -> jnp.ndarray:
    """Identity implemented as a single HBM->HBM async DMA (no grid, no VMEM)."""
    nbytes = x.size * x.dtype.itemsize
    return pl.pallas_call(
        _dma_copy_kernel,
        out_shape=jax.ShapeDtypeStruct(x.shape, x.dtype),
        in_specs=[pl.BlockSpec(memory_space=pl.ANY)],
        out_specs=pl.BlockSpec(memory_space=pl.ANY),
        scratch_shapes=[pltpu.SemaphoreType.DMA(())],
        cost_estimate=pl.CostEstimate(
            flops=0, transcendentals=0, bytes_accessed=2 * nbytes
        ),
    )(x)


# ---------------------------------------------------------------------------
# Path 2: tiled lane-dense VMEM copy (demonstration of the pipelined path).
# ---------------------------------------------------------------------------
def _identity_kernel(x_ref, o_ref):
    # Whole-tile load + full, unmasked lane-dense store.
    o_ref[...] = x_ref[...]


def _vmem_budget():
    """(block_bytes_target, vmem_limit_bytes) chosen per TPU generation."""
    cap = None
    try:
        cap = getattr(pltpu.get_tpu_info(), "vmem_capacity_bytes", None)
    except Exception:
        cap = None
    if cap is not None and cap >= (100 << 20):
        # v5e / v6e: 128 MiB physical VMEM -> 8 MiB blocks, 64 MiB scoped limit.
        return 8 << 20, 64 << 20
    # v7x (64 MiB physical) or unknown: 4 MiB blocks -> <=16 MiB double-buffered
    # in+out residency, safely under the 32 MiB scoped default.
    return 4 << 20, 32 << 20


def _choose_lane_dense_view(total_elems: int, itemsize: int):
    """Pick (rows, width, sublane_mult): width % 128 == 0, rows % sublane_mult == 0."""
    sub = max(8, 32 // itemsize)  # f32 -> 8, bf16 -> 16, int8/fp8 -> 32
    for width in (8192, 4096, 2048, 1024, 512, 256, 128):
        if total_elems % width == 0 and (total_elems // width) % sub == 0:
            return total_elems // width, width, sub
    return None, None, sub


def _pallas_tiled_copy(x: jnp.ndarray) -> jnp.ndarray:
    """Identity as a tiled, lane-dense, software-pipelined Pallas TPU copy."""
    orig_shape = x.shape
    total = x.size
    itemsize = x.dtype.itemsize

    rows, width, sub = _choose_lane_dense_view(total, itemsize)
    if rows is None:
        # No lane-dense 2D view available: use the shape-agnostic DMA copy
        # instead of a full-array VMEM block (which could OOM on v7x).
        return _pallas_dma_copy(x)

    x2d = x.reshape(rows, width)  # contiguous flatten -> free layout plumbing.

    block_bytes, vmem_limit = _vmem_budget()
    bytes_per_row = width * itemsize

    # Largest multiple of the packed sublane count fitting the block target.
    tr = max(sub, (block_bytes // bytes_per_row) // sub * sub)
    tr = min(tr, rows)
    grid = (pl.cdiv(rows, tr),)  # edge block handled by Pallas masking.

    nbytes = total * itemsize

    out = pl.pallas_call(
        _identity_kernel,
        out_shape=jax.ShapeDtypeStruct((rows, width), x.dtype),
        grid_spec=pltpu.PrefetchScalarGridSpec(
            num_scalar_prefetch=0,
            grid=grid,
            in_specs=[pl.BlockSpec((tr, width), lambda i: (i, 0))],
            out_specs=pl.BlockSpec((tr, width), lambda i: (i, 0)),
        ),
        compiler_params=pltpu.CompilerParams(
            # TODO(synk): on v7x, verify CORE_PARALLEL actually shards the copy
            # across both TensorCores; "parallel" is kept here for portability.
            dimension_semantics=("parallel",),
            vmem_limit_bytes=vmem_limit,
        ),
        # No input_output_aliases: this is a genuine 2*nbytes copy and x
        # remains valid (readable) after the call.
        cost_estimate=pl.CostEstimate(
            flops=0, transcendentals=0, bytes_accessed=2 * nbytes
        ),
    )(x2d)

    return out.reshape(orig_shape)


# ---------------------------------------------------------------------------
# Module wrapper.
# ---------------------------------------------------------------------------
class HomographyTransformDummy:
    """JAX/Pallas port of the PyTorch HomographyTransformDummy module.

    pallas_mode:
      None      -> warp/unwarp return x directly (optimal identity, default).
      "dma"     -> route through the HBM->HBM DMA copy kernel.
      "tiled"   -> route through the tiled lane-dense VMEM copy kernel.
    """

    def __init__(self, pallas_mode: str | None = None):
        # No parameters in the reference module.
        assert pallas_mode in (None, "dma", "tiled")
        self.pallas_mode = pallas_mode

    def forward(self):
        # Matches the reference semantics exactly.
        raise NotImplementedError

    def _apply(self, x: jnp.ndarray) -> jnp.ndarray:
        if self.pallas_mode == "dma":
            return _pallas_dma_copy(x)
        if self.pallas_mode == "tiled":
            return _pallas_tiled_copy(x)
        return x

    def warp(self, x: jnp.ndarray) -> jnp.ndarray:
        return self._apply(x)

    def unwarp(self, x: jnp.ndarray) -> jnp.ndarray:
        return self._apply(x)


if __name__ == "__main__":
    key = jax.random.PRNGKey(0)
    # Small NCHW input consistent with an image-like homography input.
    x = jax.random.normal(key, (2, 4, 16, 16), dtype=jnp.float32)

    # --- Fast (default) path: pure pass-through, no kernel launch. ---
    fast = HomographyTransformDummy()
    assert fast.warp(x) is x and fast.unwarp(x) is x

    # --- Pallas HBM->HBM DMA path. ---
    dma_mod = HomographyTransformDummy(pallas_mode="dma")
    warped = dma_mod.warp(x)
    unwarped = dma_mod.unwarp(warped)
    jax.block_until_ready(unwarped)
    assert warped.shape == x.shape and warped.dtype == x.dtype
    assert jnp.array_equal(warped, x)
    assert jnp.array_equal(unwarped, x)

    # --- Pallas tiled VMEM-copy path. ---
    tiled_mod = HomographyTransformDummy(pallas_mode="tiled")
    warped_t = tiled_mod.warp(x)
    unwarped_t = tiled_mod.unwarp(warped_t)
    jax.block_until_ready(unwarped_t)
    assert warped_t.shape == x.shape and warped_t.dtype == x.dtype
    assert jnp.array_equal(warped_t, x)
    assert jnp.array_equal(unwarped_t, x)

    # forward() must raise NotImplementedError, as in the reference module.
    try:
        dma_mod.forward()
        raise AssertionError("forward() should raise NotImplementedError")
    except NotImplementedError:
        pass

    print("KERNEL_OK")
</pallas_src>

<mosaic_0001>
module attributes {stable_mosaic.version = 11 : i64} {
  func.func @_dma_copy_kernel(%arg0: memref<2x4x16x16xf32, #tpu.memory_space<any>>, %arg1: memref<2x4x16x16xf32, #tpu.memory_space<any>>, %arg2: memref<!tpu.dma_semaphore, #tpu.memory_space<semaphore_mem>>) attributes {dimension_semantics = [], scalar_prefetch = 0 : i64, scratch_operands = 1 : i64, tpu.core_type = #tpu.core_type<tc>} {
    tpu.enqueue_dma source(%arg0 : memref<2x4x16x16xf32, #tpu.memory_space<any>>) target(%arg1 : memref<2x4x16x16xf32, #tpu.memory_space<any>>) target_semaphore(%arg2 : memref<!tpu.dma_semaphore, #tpu.memory_space<semaphore_mem>>)
    tpu.wait_dma2 semaphore(%arg2 : memref<!tpu.dma_semaphore, #tpu.memory_space<semaphore_mem>>) src(%arg0 : memref<2x4x16x16xf32, #tpu.memory_space<any>>) dst(%arg1 : memref<2x4x16x16xf32, #tpu.memory_space<any>>)
    return
  }
}

</mosaic_0001>

<bundles_post_ra>
// kernel: tpu_custom_call.1
= control target key start
LH: loop header
LB: loop body
LE: loop exit
PB: predicated region body
PF: predicated region fallthrough
CT: control target
= control target key end

     0   :  { %s36_s6 = smov [#allocation2]   ;;  %s37_s7 = smov [#allocation3]   ;;  %s55_s0 = inlined_call_operand.hbm [shape: f32[2,4,16,16], index: 0, kind: input, shape index: {}]   ;;  %s56_s1 = inlined_call_operand.hbm [shape: f32[2,4,16,16], index: 1, kind: output, shape index: {}]  }
   0x1   :  { %s38_s8 = smov 0  }
   0x2   :  { %18 = dma.general %s55_s0, 2048, %s56_s1, %s36_s6, %s37_s7, [#allocation4], %s38_s8, 0  }
   0x3   :  { %34 = dma.done.wait [#allocation2], 2048 }
   0x4   :  { %35 = vsyncadd [#allocation2], 4294965248 }
   0x5   :  { %24 = vsyncmov [#allocation2] }
   0x8   :  { %s25_s13 = vpop.sfrf %24 }
   0x9   :  { %p30_p0 = scmp.ne.s32.totalorder %s25_s13, 0 }
   0xb   :  { %29 = shalt.err (%p30_p0)  }

</bundles_post_ra>
